<compile_context>
chip_gen: v5e
topology: v5e:2x2
jax: 0.10.0
libtpu: 0.0.40
codegen_flags: <defaults>
</compile_context>

<pallas_src>
import functools
import math

import jax
import jax.numpy as jnp
from jax import lax
from jax.experimental import pallas as pl
from jax.experimental.pallas import tpu as pltpu


def _round_up(x, m):
    return ((x + m - 1) // m) * m


# ---------------------------------------------------------------------------
# Kernel
# ---------------------------------------------------------------------------
def _cheminfo_kernel(x_ref, w1_ref, w2_ref, w3_ref, w4_ref, w5o_ref, bias_ref,
                     out_ref, *, bias_offsets):
    """One batch tile.  x_ref: [TILE_B, d_in] f32; out_ref: [out_pad, TILE_B] f32."""
    f32 = jnp.float32
    cdt = w1_ref.dtype                                     # matmul compute dtype

    def bias_slice(off, n):
        return bias_ref[off:off + n, :]                    # [n, 1] f32 (static slice)

    def dense(h, w_ref, off):
        return (jnp.dot(w_ref[...], h, preferred_element_type=f32)
                + bias_slice(off, w_ref.shape[0]))

    # fc1: contract x's feature axis directly — no wrapper transpose/cast pass.
    x = x_ref[...].astype(cdt)                             # [TILE_B, d_in] bf16
    h = lax.dot_general(w1_ref[...], x, (((1,), (1,)), ((), ())),
                        preferred_element_type=f32)        # [50, TILE_B]
    h = jnp.maximum(h + bias_slice(bias_offsets[0], w1_ref.shape[0]), 0.0)
    h = h.astype(cdt)

    # fc2..fc4 -> relu  (each BN_i is already folded into W_{i+1}/b_{i+1};
    # dropout = identity in eval mode)
    for w_ref, off in zip((w2_ref, w3_ref, w4_ref), bias_offsets[1:4]):
        h = jnp.maximum(dense(h, w_ref, off), 0.0).astype(cdt)

    # fused (bn4-folded) fc5 + output head; rows zero-padded to a multiple of 8
    # so this is a full, unmasked lane-dense store.
    out_ref[...] = dense(h, w5o_ref, bias_offsets[4])      # [out_pad, TILE_B] f32


# ---------------------------------------------------------------------------
# Tiling helper
# ---------------------------------------------------------------------------
def _pick_tiling(B, tile_b):
    """Even-split the batch into lane-aligned tiles; >=2 steps when B > 128."""
    B = max(int(B), 1)
    tile_b = max(128, int(tile_b))
    grid_n = pl.cdiv(B, tile_b)
    if grid_n == 1 and B > 128:
        grid_n = 2                       # keep both v7x TensorCores busy
    tile = _round_up(pl.cdiv(B, grid_n), 128)
    grid_n = pl.cdiv(B, tile)
    return tile, grid_n, grid_n * tile


# ---------------------------------------------------------------------------
# Wrapper
# ---------------------------------------------------------------------------
def cheminfo_forward(params, x_chemical_info, *, tile_b=8192):
    """Fused forward on [B, cheminfo_input_dim] input -> (x_out, y_out)."""
    B, d_in = x_chemical_info.shape
    weights = (params["w1"], params["w2"], params["w3"], params["w4"],
               params["w5o"])
    bias = params["bias"]                                  # [bias_total, 1] f32
    bias_offsets = params["bias_offsets"]                  # tuple of python ints
    out_dim = params["out_dim"]
    out_pad = weights[-1].shape[0]                         # 8-aligned row count
    bias_total = bias.shape[0]

    tile, grid_n, b_pad = _pick_tiling(B, tile_b)

    x_in = x_chemical_info.astype(jnp.float32)             # no-op for f32 input
    if b_pad != B:
        x_in = jnp.pad(x_in, ((0, b_pad - B), (0, 0)))

    kernel = functools.partial(_cheminfo_kernel, bias_offsets=bias_offsets)

    # x tiles along the batch; weights / bias have constant index_maps so they
    # are DMA'd once and stay resident in VMEM across grid steps.
    in_specs = [pl.BlockSpec((tile, d_in), lambda i: (i, 0))]
    in_specs += [pl.BlockSpec(w.shape, lambda i: (0, 0)) for w in weights]
    in_specs += [pl.BlockSpec((bias_total, 1), lambda i: (0, 0))]
    out_specs = pl.BlockSpec((out_pad, tile), lambda i: (0, i))

    flops = 2 * b_pad * sum(int(w.shape[0]) * int(w.shape[1]) for w in weights)
    bytes_accessed = int(
        b_pad * d_in * 4
        + out_pad * b_pad * 4
        + sum(int(w.size) * w.dtype.itemsize for w in weights)
        + bias.size * 4)
    cost = pl.CostEstimate(flops=int(flops), transcendentals=0,
                           bytes_accessed=bytes_accessed)

    out = pl.pallas_call(
        kernel,
        out_shape=jax.ShapeDtypeStruct((out_pad, b_pad), jnp.float32),
        grid=(grid_n,),
        in_specs=in_specs,
        out_specs=out_specs,
        compiler_params=pltpu.CompilerParams(
            dimension_semantics=("parallel",),
            vmem_limit_bytes=32 * 1024 * 1024,
        ),
        cost_estimate=cost,
    )(x_in, *weights, bias)

    # Pre-sigmoid logits leave the kernel lane-dense as [out_pad, B_pad];
    # slice, transpose and apply sigmoid here so XLA fuses all three into a
    # single pass over the (half-size) kernel output.
    x_out = jnp.transpose(out[:out_dim, :B])
    y_out = jax.nn.sigmoid(x_out)
    return x_out, y_out


# ---------------------------------------------------------------------------
# Parameter folding (BN -> next linear, fc5 + output fusion, bias packing)
# ---------------------------------------------------------------------------
def fold_params(raw, *, compute_dtype=jnp.bfloat16):
    f32 = jnp.float32

    w1, b1 = raw["W1"].astype(f32), raw["b1"].astype(f32)
    # Fold BN_i (eval mode: y = s*x + t) into fc_{i+1}.
    w2 = raw["W2"] * raw["s1"][None, :]
    b2 = raw["W2"] @ raw["t1"] + raw["b2"]
    w3 = raw["W3"] * raw["s2"][None, :]
    b3 = raw["W3"] @ raw["t2"] + raw["b3"]
    w4 = raw["W4"] * raw["s3"][None, :]
    b4 = raw["W4"] @ raw["t3"] + raw["b4"]
    w5 = raw["W5"] * raw["s4"][None, :]
    b5 = raw["W5"] @ raw["t4"] + raw["b5"]
    # Fuse fc5 with the output head (no nonlinearity in between).
    w5o = raw["Wo"] @ w5
    b5o = raw["Wo"] @ b5 + raw["bo"]

    # Pad fused output rows to a multiple of 8 -> 8-sublane-aligned output slab.
    out_dim = int(w5o.shape[0])
    out_pad = _round_up(out_dim, 8)
    if out_pad != out_dim:
        w5o = jnp.pad(w5o, ((0, out_pad - out_dim), (0, 0)))
        b5o = jnp.pad(b5o, ((0, out_pad - out_dim),))

    weights = [w1, w2, w3, w4, w5o]
    biases = [b1, b2, b3, b4, b5o]

    # Pack all biases into a single [total, 1] f32 column at 8-aligned offsets
    # (one DMA instead of five tiny ones).
    offsets, off = [], 0
    for b in biases:
        offsets.append(off)
        off += _round_up(int(b.shape[0]), 8)
    bias = jnp.zeros((off, 1), f32)
    for o, b in zip(offsets, biases):
        bias = bias.at[o:o + b.shape[0], 0].set(b.astype(f32))

    params = {f"w{n}": w.astype(compute_dtype)
              for n, w in zip(("1", "2", "3", "4", "5o"), weights)}
    params["bias"] = bias
    params["bias_offsets"] = tuple(offsets)
    params["out_dim"] = out_dim
    return params


# ---------------------------------------------------------------------------
# Module replica
# ---------------------------------------------------------------------------
class ChemInfoPallas:
    """Deterministic-weight replica of the PyTorch ChemInfo module (eval mode)."""

    def __init__(self, output_dim, *, cheminfo_input_dim, cheminfo_output_dim,
                 key=None, compute_dtype=jnp.bfloat16):
        if key is None:
            key = jax.random.PRNGKey(0)
        self.output_dim = output_dim

        dims = [cheminfo_input_dim, 50, 40, 32, 20, cheminfo_output_dim,
                output_dim]
        names = ["1", "2", "3", "4", "5", "o"]
        keys = jax.random.split(key, 4 * len(names))
        raw, ki = {}, 0
        for i, name in enumerate(names):
            din, dout = dims[i], dims[i + 1]
            bound = 1.0 / math.sqrt(din)
            # Torch layout: weight [out, in], bias [out].
            raw[f"W{name}"] = jax.random.uniform(
                keys[ki], (dout, din), jnp.float32, -bound, bound)
            raw[f"b{name}"] = jax.random.uniform(
                keys[ki + 1], (dout,), jnp.float32, -bound, bound)
            ki += 2
            if name in ("1", "2", "3", "4"):
                gamma = 1.0 + 0.1 * jax.random.normal(keys[ki], (dout,), jnp.float32)
                beta = 0.1 * jax.random.normal(keys[ki + 1], (dout,), jnp.float32)
                ki += 2
                mean = jnp.zeros((dout,), jnp.float32)
                var = jnp.ones((dout,), jnp.float32)
                s = gamma / jnp.sqrt(var + 1e-5)
                t = beta - mean * s
                raw[f"s{name}"] = s
                raw[f"t{name}"] = t
        self.raw = raw
        self.params = fold_params(raw, compute_dtype=compute_dtype)

    def __call__(self, x_atom, x_bonds, x_atom_index, x_bond_index, x_mask,
                 x_chemical_info):
        # Only x_chemical_info is used, mirroring the PyTorch forward.
        del x_atom, x_bonds, x_atom_index, x_bond_index, x_mask
        return cheminfo_forward(self.params, x_chemical_info)


# ---------------------------------------------------------------------------
# References for validation
# ---------------------------------------------------------------------------
def _reference_eval(raw, x):
    """Unfused f32 reference with exact PyTorch eval-mode structure."""
    h = x
    for i in ("1", "2", "3", "4"):
        h = jnp.maximum(h @ raw[f"W{i}"].T + raw[f"b{i}"], 0.0)
        h = h * raw[f"s{i}"] + raw[f"t{i}"]            # BN (eval); dropout = id
    h = h @ raw["W5"].T + raw["b5"]
    x_out = h @ raw["Wo"].T + raw["bo"]
    return x_out, jax.nn.sigmoid(x_out)


def _reference_folded(params, x):
    """Pure-JAX replica of the folded/fused computation (same dtypes as kernel)."""
    cdt = params["w1"].dtype
    offs = params["bias_offsets"]
    bias = params["bias"]
    out_dim = params["out_dim"]
    h = jnp.transpose(x).astype(cdt)
    for i, name in enumerate(("w1", "w2", "w3", "w4")):
        w = params[name]
        b = bias[offs[i]:offs[i] + w.shape[0], :]
        h = jnp.maximum(
            jnp.dot(w, h, preferred_element_type=jnp.float32) + b, 0.0)
        h = h.astype(cdt)
    w = params["w5o"]
    b = bias[offs[4]:offs[4] + w.shape[0], :]
    x_out = jnp.dot(w, h, preferred_element_type=jnp.float32) + b
    x_out = jnp.transpose(x_out[:out_dim, :])
    return x_out, jax.nn.sigmoid(x_out)


# ---------------------------------------------------------------------------
if __name__ == "__main__":
    key = jax.random.PRNGKey(0)
    k_model, k_x, k_atom, k_bond, k_x2 = jax.random.split(key, 5)

    batch = 8
    cheminfo_input_dim = 32
    cheminfo_output_dim = 16
    output_dim = 8

    model = ChemInfoPallas(
        output_dim,
        cheminfo_input_dim=cheminfo_input_dim,
        cheminfo_output_dim=cheminfo_output_dim,
        key=k_model,
    )

    # Unused graph-structured inputs (shapes arbitrary; forward ignores them).
    x_atom = jax.random.normal(k_atom, (batch, 4, 16), jnp.float32)
    x_bonds = jax.random.normal(k_bond, (batch, 4, 16), jnp.float32)
    x_atom_index = jnp.zeros((batch, 4), jnp.int32)
    x_bond_index = jnp.zeros((batch, 4), jnp.int32)
    x_mask = jnp.ones((batch, 4), jnp.float32)
    x_chemical_info = jax.random.normal(
        k_x, (batch, cheminfo_input_dim), jnp.float32)

    x_out, y_out = model(x_atom, x_bonds, x_atom_index, x_bond_index, x_mask,
                         x_chemical_info)
    jax.block_until_ready((x_out, y_out))

    assert x_out.shape == (batch, output_dim)
    assert y_out.shape == (batch, output_dim)

    # Tight check vs. a pure-JAX replica of the same folded/fused bf16 math.
    xf, yf = _reference_folded(model.params, x_chemical_info)
    assert jnp.allclose(x_out, xf, atol=5e-4, rtol=5e-4)
    assert jnp.allclose(y_out, yf, atol=5e-4, rtol=5e-4)

    # Semantic check vs. the unfused f32 eval-mode reference (PyTorch forward);
    # tolerance covers the bf16 matmul quantization.
    xe, ye = _reference_eval(model.raw, x_chemical_info)
    assert jnp.allclose(x_out, xe, atol=5e-2, rtol=5e-2)
    assert jnp.allclose(y_out, ye, atol=5e-2, rtol=5e-2)

    # Second run with B > 128 to exercise the multi-step grid (>=2 steps for
    # v7x megacore), batch padding, and the even-split tiling path.
    batch2 = 300
    x_chem2 = jax.random.normal(k_x2, (batch2, cheminfo_input_dim), jnp.float32)
    x_out2, y_out2 = cheminfo_forward(model.params, x_chem2)
    jax.block_until_ready((x_out2, y_out2))
    assert x_out2.shape == (batch2, output_dim)
    xf2, yf2 = _reference_folded(model.params, x_chem2)
    assert jnp.allclose(x_out2, xf2, atol=5e-4, rtol=5e-4)
    assert jnp.allclose(y_out2, yf2, atol=5e-4, rtol=5e-4)

    print("KERNEL_OK")
</pallas_src>

<mosaic_0001>
module attributes {stable_mosaic.version = 11 : i64} {
  func.func @_cheminfo_kernel(%arg0: i32, %arg1: memref<128x32xf32, #tpu.memory_space<vmem>>, %arg2: memref<50x32xbf16, #tpu.memory_space<vmem>>, %arg3: memref<40x50xbf16, #tpu.memory_space<vmem>>, %arg4: memref<32x40xbf16, #tpu.memory_space<vmem>>, %arg5: memref<20x32xbf16, #tpu.memory_space<vmem>>, %arg6: memref<8x20xbf16, #tpu.memory_space<vmem>>, %arg7: memref<160x1xf32, #tpu.memory_space<vmem>>, %arg8: memref<8x128xf32, #tpu.memory_space<vmem>>) attributes {dimension_semantics = [#tpu.dimension_semantics<parallel>], iteration_bounds = array<i64: 1>, scalar_prefetch = 0 : i64, scratch_operands = 0 : i64, tpu.core_type = #tpu.core_type<tc>, window_params = [{transform_indices = @transform_0, window_bounds = array<i64: 128, 32>}, {pipeline_mode = #tpu.pipeline_mode<synchronous>, transform_indices = @transform_1, window_bounds = array<i64: 50, 32>}, {pipeline_mode = #tpu.pipeline_mode<synchronous>, transform_indices = @transform_2, window_bounds = array<i64: 40, 50>}, {pipeline_mode = #tpu.pipeline_mode<synchronous>, transform_indices = @transform_3, window_bounds = array<i64: 32, 40>}, {pipeline_mode = #tpu.pipeline_mode<synchronous>, transform_indices = @transform_4, window_bounds = array<i64: 20, 32>}, {pipeline_mode = #tpu.pipeline_mode<synchronous>, transform_indices = @transform_5, window_bounds = array<i64: 8, 20>}, {pipeline_mode = #tpu.pipeline_mode<synchronous>, transform_indices = @transform_6, window_bounds = array<i64: 160, 1>}, {transform_indices = @transform_7, window_bounds = array<i64: 8, 128>}]} {
    %c0 = arith.constant 0 : index
    %c0_0 = arith.constant 0 : index
    %0 = vector.load %arg1[%c0, %c0_0] : memref<128x32xf32, #tpu.memory_space<vmem>>, vector<128x32xf32>
    %1 = arith.truncf %0 : vector<128x32xf32> to vector<128x32xbf16>
    %c0_1 = arith.constant 0 : index
    %c0_2 = arith.constant 0 : index
    %2 = vector.load %arg2[%c0_1, %c0_2] : memref<50x32xbf16, #tpu.memory_space<vmem>>, vector<50x32xbf16>
    %cst = arith.constant dense<0.000000e+00> : vector<50x128xf32>
    %3 = tpu.matmul %2, %1, %cst {dimension_numbers = #tpu.dot_dimension_numbers<[1], [1], [0], [0], [0, 0, 1, 0], [], []>} : vector<50x32xbf16>, vector<128x32xbf16>, vector<50x128xf32> -> vector<50x128xf32>
    %c0_3 = arith.constant 0 : index
    %c0_4 = arith.constant 0 : index
    %4 = vector.load %arg7[%c0_3, %c0_4] : memref<160x1xf32, #tpu.memory_space<vmem>>, vector<50x1xf32>
    %5 = vector.broadcast %4 : vector<50x1xf32> to vector<50x128xf32>
    %6 = arith.addf %3, %5 : vector<50x128xf32>
    %cst_5 = arith.constant 0.000000e+00 : f32
    %7 = vector.broadcast %cst_5 : f32 to vector<50x128xf32>
    %8 = arith.maximumf %6, %7 : vector<50x128xf32>
    %9 = arith.truncf %8 : vector<50x128xf32> to vector<50x128xbf16>
    %c0_6 = arith.constant 0 : index
    %c0_7 = arith.constant 0 : index
    %10 = vector.load %arg3[%c0_6, %c0_7] : memref<40x50xbf16, #tpu.memory_space<vmem>>, vector<40x50xbf16>
    %cst_8 = arith.constant dense<0.000000e+00> : vector<40x128xf32>
    %11 = tpu.matmul %10, %9, %cst_8 {dimension_numbers = #tpu.dot_dimension_numbers<[1], [0], [0], [1], [0, 0, 1, 1], [], []>} : vector<40x50xbf16>, vector<50x128xbf16>, vector<40x128xf32> -> vector<40x128xf32>
    %c56 = arith.constant 56 : index
    %c0_9 = arith.constant 0 : index
    %12 = vector.load %arg7[%c56, %c0_9] : memref<160x1xf32, #tpu.memory_space<vmem>>, vector<40x1xf32>
    %13 = vector.broadcast %12 : vector<40x1xf32> to vector<40x128xf32>
    %14 = arith.addf %11, %13 : vector<40x128xf32>
    %cst_10 = arith.constant 0.000000e+00 : f32
    %15 = vector.broadcast %cst_10 : f32 to vector<40x128xf32>
    %16 = arith.maximumf %14, %15 : vector<40x128xf32>
    %17 = arith.truncf %16 : vector<40x128xf32> to vector<40x128xbf16>
    %c0_11 = arith.constant 0 : index
    %c0_12 = arith.constant 0 : index
    %18 = vector.load %arg4[%c0_11, %c0_12] : memref<32x40xbf16, #tpu.memory_space<vmem>>, vector<32x40xbf16>
    %cst_13 = arith.constant dense<0.000000e+00> : vector<32x128xf32>
    %19 = tpu.matmul %18, %17, %cst_13 {dimension_numbers = #tpu.dot_dimension_numbers<[1], [0], [0], [1], [0, 0, 1, 1], [], []>} : vector<32x40xbf16>, vector<40x128xbf16>, vector<32x128xf32> -> vector<32x128xf32>
    %c96 = arith.constant 96 : index
    %c0_14 = arith.constant 0 : index
    %20 = vector.load %arg7[%c96, %c0_14] : memref<160x1xf32, #tpu.memory_space<vmem>>, vector<32x1xf32>
    %21 = vector.broadcast %20 : vector<32x1xf32> to vector<32x128xf32>
    %22 = arith.addf %19, %21 : vector<32x128xf32>
    %cst_15 = arith.constant 0.000000e+00 : f32
    %23 = vector.broadcast %cst_15 : f32 to vector<32x128xf32>
    %24 = arith.maximumf %22, %23 : vector<32x128xf32>
    %25 = arith.truncf %24 : vector<32x128xf32> to vector<32x128xbf16>
    %c0_16 = arith.constant 0 : index
    %c0_17 = arith.constant 0 : index
    %26 = vector.load %arg5[%c0_16, %c0_17] : memref<20x32xbf16, #tpu.memory_space<vmem>>, vector<20x32xbf16>
    %cst_18 = arith.constant dense<0.000000e+00> : vector<20x128xf32>
    %27 = tpu.matmul %26, %25, %cst_18 {dimension_numbers = #tpu.dot_dimension_numbers<[1], [0], [0], [1], [0, 0, 1, 1], [], []>} : vector<20x32xbf16>, vector<32x128xbf16>, vector<20x128xf32> -> vector<20x128xf32>
    %c128 = arith.constant 128 : index
    %c0_19 = arith.constant 0 : index
    %28 = vector.load %arg7[%c128, %c0_19] : memref<160x1xf32, #tpu.memory_space<vmem>>, vector<20x1xf32>
    %29 = vector.broadcast %28 : vector<20x1xf32> to vector<20x128xf32>
    %30 = arith.addf %27, %29 : vector<20x128xf32>
    %cst_20 = arith.constant 0.000000e+00 : f32
    %31 = vector.broadcast %cst_20 : f32 to vector<20x128xf32>
    %32 = arith.maximumf %30, %31 : vector<20x128xf32>
    %33 = arith.truncf %32 : vector<20x128xf32> to vector<20x128xbf16>
    %c0_21 = arith.constant 0 : index
    %c0_22 = arith.constant 0 : index
    %34 = vector.load %arg6[%c0_21, %c0_22] : memref<8x20xbf16, #tpu.memory_space<vmem>>, vector<8x20xbf16>
    %cst_23 = arith.constant dense<0.000000e+00> : vector<8x128xf32>
    %35 = tpu.matmul %34, %33, %cst_23 {dimension_numbers = #tpu.dot_dimension_numbers<[1], [0], [0], [1], [0, 0, 1, 1], [], []>} : vector<8x20xbf16>, vector<20x128xbf16>, vector<8x128xf32> -> vector<8x128xf32>
    %c152 = arith.constant 152 : index
    %c0_24 = arith.constant 0 : index
    %36 = vector.load %arg7[%c152, %c0_24] : memref<160x1xf32, #tpu.memory_space<vmem>>, vector<8x1xf32>
    %37 = vector.broadcast %36 : vector<8x1xf32> to vector<8x128xf32>
    %38 = arith.addf %35, %37 : vector<8x128xf32>
    %c0_25 = arith.constant 0 : index
    %c0_26 = arith.constant 0 : index
    %39 = vector.load %arg8[%c0_25, %c0_26] : memref<8x128xf32, #tpu.memory_space<vmem>>, vector<8x128xf32>
    tpu.vector_store %arg8[%c0_25, %c0_26], %38 {strides = array<i32>} : memref<8x128xf32, #tpu.memory_space<vmem>>, vector<8x128xf32>,
    return
  }
  func.func @transform_0(%arg0: i32) -> (i32, i32) {
    %c0_i32 = arith.constant 0 : i32
    %c0_i32_0 = arith.constant 0 : i32
    return %arg0, %c0_i32 : i32, i32
  }
  func.func @transform_1(%arg0: i32) -> (i32, i32) {
    %c0_i32 = arith.constant 0 : i32
    %c0_i32_0 = arith.constant 0 : i32
    %c0_i32_1 = arith.constant 0 : i32
    return %c0_i32, %c0_i32_0 : i32, i32
  }
  func.func @transform_2(%arg0: i32) -> (i32, i32) {
    %c0_i32 = arith.constant 0 : i32
    %c0_i32_0 = arith.constant 0 : i32
    %c0_i32_1 = arith.constant 0 : i32
    return %c0_i32, %c0_i32_0 : i32, i32
  }
  func.func @transform_3(%arg0: i32) -> (i32, i32) {
    %c0_i32 = arith.constant 0 : i32
    %c0_i32_0 = arith.constant 0 : i32
    %c0_i32_1 = arith.constant 0 : i32
    return %c0_i32, %c0_i32_0 : i32, i32
  }
  func.func @transform_4(%arg0: i32) -> (i32, i32) {
    %c0_i32 = arith.constant 0 : i32
    %c0_i32_0 = arith.constant 0 : i32
    %c0_i32_1 = arith.constant 0 : i32
    return %c0_i32, %c0_i32_0 : i32, i32
  }
  func.func @transform_5(%arg0: i32) -> (i32, i32) {
    %c0_i32 = arith.constant 0 : i32
    %c0_i32_0 = arith.constant 0 : i32
    %c0_i32_1 = arith.constant 0 : i32
    return %c0_i32, %c0_i32_0 : i32, i32
  }
  func.func @transform_6(%arg0: i32) -> (i32, i32) {
    %c0_i32 = arith.constant 0 : i32
    %c0_i32_0 = arith.constant 0 : i32
    %c0_i32_1 = arith.constant 0 : i32
    return %c0_i32, %c0_i32_0 : i32, i32
  }
  func.func @transform_7(%arg0: i32) -> (i32, i32) {
    %c0_i32 = arith.constant 0 : i32
    %c0_i32_0 = arith.constant 0 : i32
    return %c0_i32, %arg0 : i32, i32
  }
}

</mosaic_0001>

<bundles_post_ra>
// kernel: tpu_custom_call.1
= control target key start
LH: loop header
LB: loop body
LE: loop exit
PB: predicated region body
PF: predicated region fallthrough
CT: control target
= control target key end

     0   :  { %vm119_vm0 = vcmask 261120   ;;  %s751_s0 = inlined_call_operand.vmem [shape: f32[128,32], index: 0, kind: input, shape index: {}]   ;;  %s752_s1 = inlined_call_operand.vmem [shape: bf16[50,32], index: 1, kind: input, shape index: {}]   ;;  %s753_s2 = inlined_call_operand.vmem [shape: bf16[40,50], index: 2, kind: input, shape index: {}]   ;;  %s754_s3 = inlined_call_operand.vmem [shape: bf16[32,40], index: 3, kind: input, shape index: {}]   ;;  %s755_s4 = inlined_call_operand.vmem [shape: bf16[20,32], index: 4, kind: input, shape index: {}]   ;;  %s756_s5 = inlined_call_operand.vmem [shape: bf16[8,20], index: 5, kind: input, shape index: {}]   ;;  %s757_s6 = inlined_call_operand.vmem [shape: f32[160,1], index: 6, kind: input, shape index: {}]   ;;  %s758_s7 = inlined_call_operand.hbm [shape: f32[8,128], index: 7, kind: output, shape index: {}]  }
   0x1   :  { %v42_v0 = vld [vmem:[%s751_s0 + $0x70] sm:$0xff]  ;;  %v43_v1 = vld [vmem:[%s751_s0 + $0x78] sm:$0xff]  ;;  %v40_v3 = vld [vmem:[%s751_s0 + $0x60] sm:$0xff] }
   0x2   :  { %v51_v2 = vpack.c.bf16 %v43_v1, %v42_v0  ;;  %v41_v4 = vld [vmem:[%s751_s0 + $0x68] sm:$0xff] }
   0x4   :  { %v154_v5 = vsel %vm119_vm0, %v51_v2, 0 }
   0x5   :  { %12 = vsyncpa [#allocation3], 0  ;;  %156 = vmatpush.bf16.xpose.msra.mxu0 %v154_v5  ;;  %v50_v6 = vpack.c.bf16 %v41_v4, %v40_v3  ;;  %v38_v8 = vld [vmem:[%s751_s0 + $0x50] sm:$0xff]  ;;  %v39_v9 = vld [vmem:[%s751_s0 + $0x58] sm:$0xff]  ;;  %v548_v24 = vmov 0   ;;  %vm253_vm1 = vcmask 1040384  }
   0x6   :  { %v49_v10 = vpack.c.bf16 %v39_v9, %v38_v8  ;;  %v36_v12 = vld [vmem:[%s751_s0 + $0x40] sm:$0xff]  ;;  %v37_v13 = vld [vmem:[%s751_s0 + $0x48] sm:$0xff]  ;;  %v34_v16 = vld [vmem:[%s751_s0 + $0x30] sm:$0xff]  ;;  %519 = vset.pattern.permute.xlu0 %v548_v24  ;;  %520 = vset.pattern.permute.xlu1 %v548_v24  ;;  %vm243_vm2 = vcmask 408576   ;;  %vm333_vm3 = vcmask 1043456   ;;  %vm326_vm4 = vcmask 326656  }
   0x7   :  { %v151_v7 = vsel %vm119_vm0, %v50_v6, 0  ;;  %v48_v14 = vpack.c.bf16 %v37_v13, %v36_v12  ;;  %v35_v17 = vld [vmem:[%s751_s0 + $0x38] sm:$0xff]  ;;  %v32_v20 = vld [vmem:[%s751_s0 + $0x20] sm:$0xff]  ;;  %v33_v21 = vld [vmem:[%s751_s0 + $0x28] sm:$0xff]  ;;  %521 = vset.pattern.permute.xlu2 %v548_v24  ;;  %vm431_vm5 = vcmask 1041408   ;;  %vm427_vm6 = vcmask 162816  }
   0x8   :  { %v148_v11 = vsel %vm119_vm0, %v49_v10, 0  ;;  %v47_v18 = vpack.c.bf16 %v35_v17, %v34_v16  ;;  %v65_v22 = vld [vmem:[%s757_s6 + $0x30] sm:$0x3]  ;;  %v64_v23 = vld [vmem:[%s757_s6 + $0x28] sm:$0xff]  ;;  %v46_v25 = vpack.c.bf16 %v33_v21, %v32_v20  ;;  %v31_v28 = vld [vmem:[%s751_s0 + $0x18] sm:$0xff]  ;;  %s549_s21 = smov [#allocation2]  }
   0x9   :  { %v145_v15 = vsel %vm119_vm0, %v48_v14, 0  ;;  %98 = vperm.xlu0 %519, %v65_v22   ;;  %93 = vperm.xlu1 %520, %v64_v23   ;;  %v30_v27 = vld [vmem:[%s751_s0 + $0x10] sm:$0xff]  ;;  %v63_v29 = vld [vmem:[%s757_s6 + $0x20] sm:$0xff]  ;;  %v29_v33 = vld [vmem:[%s751_s0 + $0x8] sm:$0xff]  ;;  %s456_s24 = sshll.u32 %s758_s7, 4  ;;  %s457_s24 = int_to_ptr.hbm [resolvable:$true] %s456_s24 }
   0xa   :  { %v142_v19 = vsel %vm119_vm0, %v47_v18, 0  ;;  %v139_v26 = vsel %vm119_vm0, %v46_v25, 0  ;;  %v45_v30 = vpack.c.bf16 %v31_v28, %v30_v27  ;;  %v28_v32 = vld [vmem:[%s751_s0] sm:$0xff]  ;;  %v60_v34 = vld [vmem:[%s757_s6 + $0x8] sm:$0xff]  ;;  %v61_v35 = vld [vmem:[%s757_s6 + $0x10] sm:$0xff]  ;;  %s454_s0 = sshll.u32 %s549_s21, 4  ;;  %s455_s0 = int_to_ptr.vmem [resolvable:$true] %s454_s0 }
   0xb   :  { %v62_v36 = vld [vmem:[%s757_s6 + $0x18] sm:$0xff]  ;;  %v44_v37 = vpack.c.bf16 %v29_v33, %v28_v32  ;;  %v203_v40 = vld [vmem:[%s757_s6 + $0x50] sm:$0xff]  ;;  %v509_v41 = vld [vmem:[%s752_s1] sm:$0xff] }
   0xc   :  { %v136_v31 = vsel %vm119_vm0, %v45_v30, 0  ;;  %83 = vperm.xlu2 %521, %v62_v36   ;;  %v204_v39 = vld [vmem:[%s757_s6 + $0x58] sm:$0xff]  ;;  %v59_v42 = vld [vmem:[%s757_s6] sm:$0xff]  ;;  %v294_v44 = vld [vmem:[%s757_s6 + $0x70] sm:$0xff] }
   0xd   :  { %157 = vmatpush.bf16.xpose.msra.mxu0 %v151_v7  ;;  %v133_v38 = vsel %vm119_vm0, %v44_v37, 0  ;;  %v200_v43 = vld [vmem:[%s757_s6 + $0x38] sm:$0xff]  ;;  %v293_v46 = vld [vmem:[%s757_s6 + $0x68] sm:$0xff]  ;;  %v367_v48 = vld [vmem:[%s757_s6 + $0x90] sm:$0xf] }
   0xe   :  { %v295_v45 = vld [vmem:[%s757_s6 + $0x78] sm:$0xff]  ;;  %v510_v47 = vld [vmem:[%s752_s1 + $0x8] sm:$0xff]  ;;  %v201_v52 = vld [vmem:[%s757_s6 + $0x40] sm:$0xff] }
   0xf   :  { %v366_v49 = vld [vmem:[%s757_s6 + $0x88] sm:$0xff]  ;;  %v421_v51 = vld [vmem:[%s757_s6 + $0x98] sm:$0xff]  ;;  %v511_v53 = vld [vmem:[%s752_s1 + $0x10] sm:$0xff] }
  0x10   :  { %v202_v50 = vld [vmem:[%s757_s6 + $0x48] sm:$0xff]  ;;  %v292_v54 = vld [vmem:[%s757_s6 + $0x60] sm:$0xff]  ;;  %v58_v55 = vld [vmem:[%s752_s1 + $0x18] sm:$0x1] }
  0x11   :  { %88 = vperm.xlu0 %519, %v63_v29   ;;  %78 = vperm.xlu1 %520, %v61_v35   ;;  %v365_v56 = vld [vmem:[%s757_s6 + $0x80] sm:$0xff]  ;;  %v114_v57 = vunpack.c.l.b16 %v58_v55  ;;  %v513_v30 = vld [vmem:[%s753_s2 + $0x8] sm:$0xff] }
  0x12   :  { %v512_v29 = vld [vmem:[%s753_s2] sm:$0xff] }
  0x13   :  { %v118_v58 = vpack.c.b16 %v114_v57, %v114_v57 }
  0x14   :  { %68 = vperm.xlu2 %521, %v59_v42  }
  0x15   :  { %158 = vmatpush.bf16.xpose.msra.mxu0 %v148_v11 }
  0x19   :  { %73 = vperm.xlu0 %519, %v60_v34   ;;  %227 = vperm.xlu1 %520, %v204_v39  }
  0x1c   :  { %217 = vperm.xlu2 %521, %v202_v50  }
  0x1d   :  { %159 = vmatpush.bf16.xpose.msra.mxu0 %v145_v15 }
  0x21   :  { %222 = vperm.xlu0 %519, %v203_v40   ;;  %207 = vperm.xlu1 %520, %v200_v43  }
  0x24   :  { %212 = vperm.xlu2 %521, %v201_v52  }
  0x25   :  { %160 = vmatpush.bf16.xpose.msra.mxu0 %v142_v19 }
  0x29   :  { %308 = vperm.xlu0 %519, %v294_v44   ;;  %313 = vperm.xlu1 %520, %v295_v45  }
  0x2c   :  { %298 = vperm.xlu2 %521, %v292_v54  }
  0x2d   :  { %161 = vmatpush.bf16.xpose.msra.mxu0 %v139_v26 }
  0x31   :  { %303 = vperm.xlu0 %519, %v293_v46   ;;  %380 = vperm.xlu1 %520, %v367_v48  }
  0x34   :  { %370 = vperm.xlu2 %521, %v365_v56  }
  0x35   :  { %162 = vmatpush.bf16.xpose.msra.mxu0 %v136_v31  ;;  %v199_v31 = vld [vmem:[%s753_s2 + $0x10] sm:$0xf] }
  0x36   :  { %v239_v32 = vunpack.c.l.b16 %v199_v31 }
  0x38   :  { %v242_v33 = vpack.c.b16 %v239_v32, %v239_v32 }
  0x39   :  { %375 = vperm.xlu0 %519, %v366_v49   ;;  %424 = vperm.xlu1 %520, %v421_v51  }
  0x3d   :  { %163 = vmatpush.bf16.xpose.msra.mxu0 %v133_v38 }
  0x44   :  { %477 = vmatmul.msk.bf16.vlgmr.msra.gmra.mxu0 %vm119_vm0, %v509_v41 }
  0x54   :  { %478 = vmatmul.msk.bf16.gmra.mxu0 %vm119_vm0, %v510_v47 }
  0x64   :  { %479 = vmatmul.msk.bf16.gmra.mxu0 %vm119_vm0, %v511_v53 }
  0x66   :  { %v84_v4 = vpop.permute.xlu2 %83 }
  0x6e   :  { %v69_v19 = vpop.permute.xlu2 %68 }
  0x74   :  { %480 = vmatmul.msk.bf16.gmra.mxu0 %vm119_vm0, %v118_v58 }
  0x76   :  { %v218_v38 = vpop.permute.xlu2 %217 }
  0x7b   :  { %v99_v0 = vpop.permute.xlu0 %98  ;;  %v94_v3 = vpop.permute.xlu1 %93 }
  0x7e   :  { %v213_v46 = vpop.permute.xlu2 %212 }
  0x83   :  { %v89_v2 = vpop.permute.xlu0 %88  ;;  %v79_v14 = vpop.permute.xlu1 %78 }
  0x8b   :  { %v74_v13 = vpop.permute.xlu0 %73  ;;  %v228_v39 = vpop.permute.xlu1 %227 }
  0x93   :  { %v223_v41 = vpop.permute.xlu0 %222  ;;  %v208_v50 = vpop.permute.xlu1 %207 }
  0xc1   :  { %v165_v59 = vpop.f32.mrf.mxu0 }
  0xc2   :  { %v166_v23 = vadd.f32 %v165_v59, %v69_v19  ;;  %v514_v59 = vld [vmem:[%s754_s3] sm:$0xff] }
  0xc4   :  { %v184_v27 = vmax.f32 %v166_v23, 0.0 }
  0xc9   :  { %v167_v60 = vpop.f32.mrf.mxu0 }
  0xca   :  { %v168_v20 = vadd.f32 %v167_v60, %v74_v13  ;;  %v515_v60 = vld [vmem:[%s754_s3 + $0x8] sm:$0xff] }
  0xcc   :  { %v185_v25 = vmax.f32 %v168_v20, 0.0 }
  0xce   :  { %v191_v28 = vpack.c.bf16 %v185_v25, %v184_v27 }
  0xd1   :  { %v170_v61 = vpop.f32.mrf.mxu0 }
  0xd2   :  { %v171_v16 = vadd.f32 %v170_v61, %v79_v14 }
  0xd4   :  { %v186_v24 = vmax.f32 %v171_v16, 0.0  ;;  %v364_v16 = vld [vmem:[%s755_s4 + $0x8] sm:$0x3] }
  0xd9   :  { %v172_v62 = vpop.f32.mrf.mxu0 }
  0xda   :  { %v173_v11 = vadd.f32 %v172_v62, %v84_v4 }
  0xdc   :  { %v187_v21 = vmax.f32 %v173_v11, 0.0 }
  0xde   :  { %v192_v26 = vpack.c.bf16 %v187_v21, %v186_v24 }
  0xe1   :  { %v175_v63 = vpop.f32.mrf.mxu0 }
  0xe2   :  { %v176_v9 = vadd.f32 %v175_v63, %v89_v2  ;;  %v309_v63 = vpop.permute.xlu0 %308 }
  0xe4   :  { %v188_v17 = vmax.f32 %v176_v9, 0.0 }
  0xe9   :  { %v177_v1 = vpop.f32.mrf.mxu0 }
  0xea   :  { %v178_v7 = vadd.f32 %v177_v1, %v94_v3  ;;  %v314_v1 = vpop.permute.xlu1 %313  ;;  %v304_v3 = vpop.permute.xlu0 %303 }
  0xec   :  { %v189_v12 = vmax.f32 %v178_v7, 0.0  ;;  %v299_v7 = vpop.permute.xlu2 %298 }
  0xee   :  { %v193_v22 = vpack.c.bf16 %v189_v12, %v188_v17  ;;  %v388_v17 = vunpack.c.l.b16 %v364_v16 }
  0xf1   :  { %v180_v5 = vpop.f32.mrf.mxu0 }
  0xf2   :  { %v181_v6 = vadd.f32 %v180_v5, %v99_v0  ;;  %v381_v21 = vpop.permute.xlu1 %380  ;;  %v376_v23 = vpop.permute.xlu0 %375 }
  0xf4   :  { %v190_v8 = vmax.f32 %v181_v6, 0.0 }
  0xf6   :  { %v194_v10 = vpack.c.bf16 %v190_v8, %v190_v8 }
  0xf8   :  { %v255_v15 = vsel %vm253_vm1, %v194_v10, 0 }
  0xf9   :  { %v182_v18 = vpop.f32.mrf.mxu0  ;;  %261 = vmatpush.bf16.msra.mxu1 %v255_v15  ;;  %v516_v15 = vld [vmem:[%s755_s4] sm:$0xff] }
  0xfa   :  { %v390_v18 = vpack.c.b16 %v388_v17, %v388_v17 }
  0xfd   :  { %262 = vmatpush.bf16.msra.mxu1 %v193_v22 }
 0x101   :  { %263 = vmatpush.bf16.msra.mxu1 %v192_v26  ;;  %v371_v26 = vpop.permute.xlu2 %370 }
 0x105   :  { %264 = vmatpush.bf16.msra.mxu1 %v191_v28 }
 0x108   :  { %489 = vmatmul.msk.bf16.vlgmr.msra.gmra.mxu1 %vm243_vm2, %v512_v29 }
 0x118   :  { %490 = vmatmul.msk.bf16.gmra.mxu1 %vm243_vm2, %v513_v30 }
 0x128   :  { %491 = vmatmul.msk.bf16.gmra.mxu1 %vm243_vm2, %v242_v33 }
 0x185   :  { %v266_v34 = vpop.f32.mrf.mxu1 }
 0x186   :  { %v267_v52 = vadd.f32 %v266_v34, %v208_v50 }
 0x188   :  { %v280_v57 = vmax.f32 %v267_v52, 0.0 }
 0x18d   :  { %v268_v35 = vpop.f32.mrf.mxu1 }
 0x18e   :  { %v269_v48 = vadd.f32 %v268_v35, %v213_v46  ;;  %v420_v35 = vld [vmem:[%s756_s5] sm:$0xf] }
 0x190   :  { %v281_v55 = vmax.f32 %v269_v48, 0.0 }
 0x192   :  { %v285_v58 = vpack.c.bf16 %v281_v55, %v280_v57 }
 0x195   :  { %v271_v36 = vpop.f32.mrf.mxu1 }
 0x196   :  { %v272_v45 = vadd.f32 %v271_v36, %v218_v38  ;;  %v425_v36 = vpop.permute.xlu1 %424 }
 0x198   :  { %v282_v53 = vmax.f32 %v272_v45, 0.0 }
 0x19d   :  { %v273_v37 = vpop.f32.mrf.mxu1 }
 0x19e   :  { %v274_v43 = vadd.f32 %v273_v37, %v223_v41 }
 0x1a0   :  { %v283_v49 = vmax.f32 %v274_v43, 0.0 }
 0x1a2   :  { %v286_v56 = vpack.c.bf16 %v283_v49, %v282_v53 }
 0x1a5   :  { %v276_v40 = vpop.f32.mrf.mxu1 }
 0x1a6   :  { %v277_v42 = vadd.f32 %v276_v40, %v228_v39 }
 0x1a8   :  { %v284_v44 = vmax.f32 %v277_v42, 0.0 }
 0x1aa   :  { %v287_v47 = vpack.c.bf16 %v284_v44, %v284_v44 }
 0x1ac   :  { %v335_v51 = vsel %vm333_vm3, %v287_v47, 0 }
 0x1ad   :  { %v278_v54 = vpop.f32.mrf.mxu1  ;;  %342 = vmatpush.bf16.msra.mxu2 %v335_v51 }
 0x1b1   :  { %343 = vmatpush.bf16.msra.mxu2 %v286_v56 }
 0x1b5   :  { %344 = vmatpush.bf16.msra.mxu2 %v285_v58 }
 0x1b8   :  { %500 = vmatmul.msk.bf16.vlgmr.msra.gmra.mxu2 %vm326_vm4, %v514_v59 }
 0x1c8   :  { %501 = vmatmul.msk.bf16.gmra.mxu2 %vm326_vm4, %v515_v60 }
 0x23b   :  { %v346_v61 = vpop.f32.mrf.mxu2 }
 0x23c   :  { %v347_v8 = vadd.f32 %v346_v61, %v299_v7 }
 0x23e   :  { %v356_v13 = vmax.f32 %v347_v8, 0.0 }
 0x243   :  { %v348_v62 = vpop.f32.mrf.mxu2 }
 0x244   :  { %v349_v5 = vadd.f32 %v348_v62, %v304_v3 }
 0x246   :  { %v357_v11 = vmax.f32 %v349_v5, 0.0 }
 0x248   :  { %v360_v14 = vpack.c.bf16 %v357_v11, %v356_v13 }
 0x24b   :  { %v351_v0 = vpop.f32.mrf.mxu2 }
 0x24c   :  { %v352_v2 = vadd.f32 %v351_v0, %v309_v63 }
 0x24e   :  { %v358_v9 = vmax.f32 %v352_v2, 0.0 }
 0x253   :  { %v353_v4 = vpop.f32.mrf.mxu2 }
 0x254   :  { %v354_v6 = vadd.f32 %v353_v4, %v314_v1 }
 0x256   :  { %v359_v10 = vmax.f32 %v354_v6, 0.0 }
 0x258   :  { %v361_v12 = vpack.c.bf16 %v359_v10, %v358_v9 }
 0x25a   :  { %403 = vmatpush.bf16.msra.mxu3 %v361_v12 }
 0x25e   :  { %404 = vmatpush.bf16.msra.mxu3 %v360_v14 }
 0x261   :  { %506 = vmatmul.msk.bf16.vlgmr.msra.gmra.mxu3 %vm119_vm0, %v516_v15 }
 0x271   :  { %507 = vmatmul.msk.bf16.gmra.mxu3 %vm119_vm0, %v390_v18 }
 0x2e4   :  { %v406_v19 = vpop.f32.mrf.mxu3 }
 0x2e5   :  { %v407_v28 = vadd.f32 %v406_v19, %v371_v26 }
 0x2e7   :  { %v415_v32 = vmax.f32 %v407_v28, 0.0 }
 0x2ec   :  { %v408_v20 = vpop.f32.mrf.mxu3 }
 0x2ed   :  { %v409_v25 = vadd.f32 %v408_v20, %v376_v23 }
 0x2ef   :  { %v416_v30 = vmax.f32 %v409_v25, 0.0 }
 0x2f1   :  { %v418_v34 = vpack.c.bf16 %v416_v30, %v415_v32 }
 0x2f4   :  { %v411_v22 = vpop.f32.mrf.mxu3 }
 0x2f5   :  { %v412_v24 = vadd.f32 %v411_v22, %v381_v21 }
 0x2f7   :  { %v417_v27 = vmax.f32 %v412_v24, 0.0 }
 0x2f9   :  { %v419_v29 = vpack.c.bf16 %v417_v27, %v417_v27 }
 0x2fb   :  { %v433_v31 = vsel %vm431_vm5, %v419_v29, 0 }
 0x2fc   :  { %v413_v33 = vpop.f32.mrf.mxu3  ;;  %441 = vmatpush.bf16.msrb.mxu3 %v433_v31 }
 0x300   :  { %442 = vmatpush.bf16.msrb.mxu3 %v418_v34 }
 0x303   :  { %508 = vmatmul.msk.bf16.vlgmr.msrb.gmra.mxu3 %vm427_vm6, %v420_v35 }
 0x386   :  { %v444_v37 = vpop.f32.mrf.mxu3 }
 0x387   :  { %v445_v38 = vadd.f32 %v444_v37, %v425_v36 }
 0x389   :  { %448 = vst [vmem:[#allocation2] sm:$0xff] %v445_v38 }
 0x38a   :  { %459 = dma.vmem_to_hbm [thread:$0]  %s455_s0, 128, %s457_s24, [#allocation3]  }
 0x38e   :  { %v446_v39 = vpop.f32.mrf.mxu3 }
 0x38f   :  { %546 = dma.done.wait [#allocation3], 128  }
 0x390   :  { %547 = vsyncadd [#allocation3], 4294967168 }
 0x391   :  { %464 = vsyncpa [#allocation3], 1 }

</bundles_post_ra>
